<compile_context>
chip_gen: v7x
topology: tpu7x:2x2x1
jax: 0.10.0
libtpu: 0.0.40
codegen_flags: <defaults>
</compile_context>

<pallas_src>
import math

import numpy as np
import jax
import jax.numpy as jnp
from jax.experimental import pallas as pl
from jax.experimental.pallas import tpu as pltpu


_LANE = 128
_TARGET_LANE = 1024          # widen packed rows toward 1024 lanes when C is small
_MIN_GRID_STEPS = 8          # keep enough parallel steps to feed v7x's two TensorCores
_MIN_TR_FOR_SPLIT = 64       # ...but never shrink tiles below 64 rows to get them
_VMEM_LIMIT_CAP = 48 << 20   # stay well under v7x's 64 MiB physical VMEM


def _round_up(x, m):
    return ((x + m - 1) // m) * m


def _make_kernel(beta, has_cw, has_w):
    """Build a kernel specialized on beta / presence of the optional weights."""
    use_l1 = beta < 1e-5
    inv_2beta = 0.0 if use_l1 else 0.5 / beta   # trace-time constant, no per-element divide
    half_beta = 0.5 * beta

    def kernel(*refs):
        it = iter(refs)
        x_ref = next(it)                       # (tr, lane)
        t_ref = next(it)                       # (tr, lane)
        cw_ref = next(it) if has_cw else None  # (1, lane)  constant block, fetched once
        w_ref = next(it) if has_w else None    # (tr, G)    compact per-anchor weights
        e_ref = next(it) if has_w else None    # (G, lane)  one-hot expansion, fetched once
        o_ref = next(it)                       # (tr, lane)

        x = x_ref[...]
        t = t_ref[...]
        # target = where(isnan(target), input, target)
        t = jnp.where(jnp.isnan(t), x, t)
        diff = x - t
        if has_cw:
            diff = diff * cw_ref[...]          # broadcast (1, lane) over sublanes

        n = jnp.abs(diff)
        if use_l1:
            loss = n
        else:
            loss = jnp.where(n < beta, n * n * inv_2beta, n - half_beta)

        if has_w:
            # Expand each per-anchor weight across its C codes on the (idle) MXU:
            #   w_full[r, g*C + c] = w[r, g]   via   w @ E.
            # (If VMEM ever gets tight at very large tiles, this could be chunked over
            #  row sub-slabs; not needed at the ~2 MiB/stream default.)
            w_full = jnp.dot(w_ref[...], e_ref[...],
                             preferred_element_type=jnp.float32)
            loss = loss * w_full.astype(loss.dtype)

        o_ref[...] = loss.astype(o_ref.dtype)

    return kernel


def weighted_smooth_l1_loss(inputs, target, weights=None, code_weights=None,
                            beta=1.0 / 9.0, row_tile_bytes=2 << 20):
    """JAX/Pallas equivalent of WeightedSmoothL1Loss.forward.

    Args:
      inputs:  (B, A, C) float tensor (encoded predictions).
      target:  (B, A, C) float tensor (regression targets, may contain NaN).
      weights: (B, A) float tensor or None.
      code_weights: (C,) float array/list or None.
      beta: scalar float (compile-time constant).
      row_tile_bytes: target bytes per input stream per grid step (~2 MiB default).

    Returns:
      loss: (B, A, C) float tensor, no reduction (matches the PyTorch module).
    """
    B, A, C = inputs.shape
    assert target.shape == (B, A, C)
    dtype = inputs.dtype
    itemsize = jnp.dtype(dtype).itemsize
    has_cw = code_weights is not None
    has_w = weights is not None

    # --- lane packing: G anchors per packed row, lane = G*C multiple of 128 (~<=1024)
    g0 = _LANE // math.gcd(C, _LANE)
    lane0 = g0 * C                            # = lcm(C, 128)
    mult = max(1, _TARGET_LANE // lane0)      # widen toward 1024 lanes when C is tiny
    G = g0 * mult
    lane = G * C

    A_tot = B * A
    A_pad = _round_up(A_tot, G)               # pad only to a multiple of G (usually a no-op)
    rows = A_pad // G

    # --- row tiling: ~row_tile_bytes per stream per step, sublane aligned
    sub = max(8, 32 // itemsize)              # 8 for f32, 16 for bf16 (packed sublanes)
    if rows < sub:
        # Tiny problem: pad up to one full sublane-aligned block (< G*sub anchors, cheap)
        # so every block (and the MXU matmul M-dim) stays sublane aligned.
        rows = sub
        A_pad = rows * G

    tr = max(sub, (row_tile_bytes // (itemsize * lane)) // sub * sub)
    tr = min(tr, (rows // sub) * sub)
    if rows > tr:
        # Keep >= _MIN_GRID_STEPS parallel steps (v7x megacore), but not with tiny tiles.
        tr_split = (rows // _MIN_GRID_STEPS) // sub * sub
        if tr_split >= _MIN_TR_FOR_SPLIT:
            tr = min(tr, tr_split)
    grid = pl.cdiv(rows, tr)                  # ragged last block handled by Pallas masking

    def pack(x3):  # (B, A, C) -> (rows, lane); pure free reshape when no pad is needed
        flat = x3.reshape(A_tot, C)
        if A_pad != A_tot:
            flat = jnp.pad(flat, ((0, A_pad - A_tot), (0, 0)))
        return flat.reshape(rows, lane)

    x_p = pack(inputs)
    t_p = pack(target.astype(dtype))

    operands = [x_p, t_p]
    in_specs = [
        pl.BlockSpec((tr, lane), lambda r: (r, 0)),   # input
        pl.BlockSpec((tr, lane), lambda r: (r, 0)),   # target
    ]
    bytes_accessed = 3 * rows * lane * itemsize

    if has_cw:
        cw = jnp.asarray(code_weights, dtype=dtype).reshape(1, C)
        operands.append(jnp.tile(cw, (1, G)))                      # (1, lane)
        in_specs.append(pl.BlockSpec((1, lane), lambda r: (0, 0)))
        bytes_accessed += lane * itemsize

    if has_w:
        assert weights.shape == (B, A)
        w_flat = weights.astype(dtype).reshape(A_tot)
        if A_pad != A_tot:
            w_flat = jnp.pad(w_flat, (0, A_pad - A_tot))
        w_p = w_flat.reshape(rows, G)                              # compact weight stream
        # One-hot expansion matrix E[g, g*C + c] = 1 (constant block, fetched once).
        e_mat = jnp.repeat(jnp.eye(G, dtype=dtype), C, axis=1)     # (G, lane)
        operands += [w_p, e_mat]
        in_specs += [pl.BlockSpec((tr, G), lambda r: (r, 0)),
                     pl.BlockSpec((G, lane), lambda r: (0, 0))]
        bytes_accessed += (rows * G + G * lane) * itemsize

    kernel = _make_kernel(float(beta), has_cw, has_w)

    # --- VMEM budget: 2 buffers x (x, t, out) + weight stream + constants + live w_full
    vmem_need = 3 * 2 * tr * lane * itemsize
    if has_cw:
        vmem_need += 2 * lane * itemsize
    if has_w:
        vmem_need += 2 * tr * G * itemsize        # weight stream (double-buffered)
        vmem_need += 2 * G * lane * itemsize      # one-hot E
        vmem_need += tr * lane * 4                # live f32 w_full intermediate
    vmem_limit = min(_VMEM_LIMIT_CAP,
                     max(32 << 20, int(vmem_need * 1.5) + (4 << 20)))

    cost = pl.CostEstimate(
        flops=int(rows * lane * (6 + (2 * G if has_w else 0))),
        transcendentals=0,
        bytes_accessed=int(bytes_accessed),
    )

    out_packed = pl.pallas_call(
        kernel,
        out_shape=jax.ShapeDtypeStruct((rows, lane), dtype),
        grid_spec=pltpu.PrefetchScalarGridSpec(
            num_scalar_prefetch=0,
            grid=(grid,),
            in_specs=in_specs,
            out_specs=pl.BlockSpec((tr, lane), lambda r: (r, 0)),
        ),
        compiler_params=pltpu.CompilerParams(
            dimension_semantics=("parallel",),
            vmem_limit_bytes=vmem_limit),
        cost_estimate=cost,
    )(*operands)

    out_flat = out_packed.reshape(A_pad, C)
    if A_pad != A_tot:
        out_flat = out_flat[:A_tot]
    return out_flat.reshape(B, A, C)


def _reference(inputs, target, weights, code_weights, beta):
    # Pure-JAX reference for correctness checking.
    target = jnp.where(jnp.isnan(target), inputs, target)
    diff = inputs - target
    if code_weights is not None:
        diff = diff * code_weights.reshape(1, 1, -1)
    n = jnp.abs(diff)
    if beta < 1e-5:
        loss = n
    else:
        loss = jnp.where(n < beta, 0.5 * n * n / beta, n - 0.5 * beta)
    if weights is not None:
        loss = loss * weights[..., None]
    return loss


def _make_inputs(key, B, A, C, nan_p=0.1):
    k1, k2, k3, k4 = jax.random.split(key, 4)
    inputs = jax.random.normal(k1, (B, A, C), dtype=jnp.float32)
    target = jax.random.normal(k2, (B, A, C), dtype=jnp.float32)
    nan_mask = jax.random.bernoulli(k3, p=nan_p, shape=(B, A, C))
    target = jnp.where(nan_mask, jnp.nan, target)
    weights = jax.random.uniform(k4, (B, A), dtype=jnp.float32)
    code_weights = jnp.linspace(0.5, 1.5, C, dtype=jnp.float32)
    return inputs, target, weights, code_weights


if __name__ == "__main__":
    key = jax.random.PRNGKey(0)
    k_a, k_b = jax.random.split(key)

    # --- Test 1: small pcdet-like shapes, full path (code_weights + per-anchor weights).
    B, A, C = 2, 16, 8
    beta = 1.0 / 9.0
    inputs, target, weights, code_weights = _make_inputs(k_a, B, A, C)

    out = weighted_smooth_l1_loss(inputs, target, weights, code_weights, beta)
    out = jax.block_until_ready(out)
    ref = _reference(inputs, target, weights, code_weights, beta)
    assert out.shape == (B, A, C)
    assert jnp.allclose(out, ref, atol=1e-6, rtol=1e-5), "mismatch vs reference (weighted)"

    # --- Test 2: specialized path (no weights, no code_weights) + L1 fallback (beta<1e-5).
    out2 = weighted_smooth_l1_loss(inputs, target, None, None, 0.0)
    out2 = jax.block_until_ready(out2)
    ref2 = _reference(inputs, target, None, None, 0.0)
    assert jnp.allclose(out2, ref2, atol=1e-6, rtol=1e-5), "mismatch vs reference (plain L1)"

    # --- Test 3: C=7 (typical pcdet box code), anchor count not a multiple of G, small
    #     forced tile so the grid has a ragged (masked) last row-block.
    B3, A3, C3 = 2, 600, 7
    inputs3, target3, weights3, code_weights3 = _make_inputs(k_b, B3, A3, C3)
    out3 = weighted_smooth_l1_loss(inputs3, target3, weights3, code_weights3, beta,
                                   row_tile_bytes=32 << 10)
    out3 = jax.block_until_ready(out3)
    ref3 = _reference(inputs3, target3, weights3, code_weights3, beta)
    assert out3.shape == (B3, A3, C3)
    assert jnp.allclose(out3, ref3, atol=1e-6, rtol=1e-5), "mismatch vs reference (ragged)"

    print("KERNEL_OK")
</pallas_src>

<mosaic_0001>
module attributes {stable_mosaic.version = 11 : i64} {
  func.func @kernel(%arg0: i32, %arg1: memref<8x1024xf32, #tpu.memory_space<vmem>>, %arg2: memref<8x1024xf32, #tpu.memory_space<vmem>>, %arg3: memref<1x1024xf32, #tpu.memory_space<vmem>>, %arg4: memref<8x128xf32, #tpu.memory_space<vmem>>, %arg5: memref<128x1024xf32, #tpu.memory_space<vmem>>, %arg6: memref<8x1024xf32, #tpu.memory_space<vmem>>) attributes {dimension_semantics = [#tpu.dimension_semantics<parallel>], iteration_bounds = array<i64: 1>, scalar_prefetch = 0 : i64, scratch_operands = 0 : i64, tpu.core_type = #tpu.core_type<tc>, window_params = [{transform_indices = @transform_0, window_bounds = array<i64: 8, 1024>}, {transform_indices = @transform_1, window_bounds = array<i64: 8, 1024>}, {pipeline_mode = #tpu.pipeline_mode<synchronous>, transform_indices = @transform_2, window_bounds = array<i64: 1, 1024>}, {transform_indices = @transform_3, window_bounds = array<i64: 8, 128>}, {pipeline_mode = #tpu.pipeline_mode<synchronous>, transform_indices = @transform_4, window_bounds = array<i64: 128, 1024>}, {transform_indices = @transform_5, window_bounds = array<i64: 8, 1024>}]} {
    %c0 = arith.constant 0 : index
    %c0_0 = arith.constant 0 : index
    %0 = vector.load %arg1[%c0, %c0_0] : memref<8x1024xf32, #tpu.memory_space<vmem>>, vector<8x1024xf32>
    %c0_1 = arith.constant 0 : index
    %c0_2 = arith.constant 0 : index
    %1 = vector.load %arg2[%c0_1, %c0_2] : memref<8x1024xf32, #tpu.memory_space<vmem>>, vector<8x1024xf32>
    %2 = arith.cmpf one, %1, %1 : vector<8x1024xf32>
    %3 = arith.select %2, %0, %1 : vector<8x1024xi1>, vector<8x1024xf32>
    %4 = arith.subf %0, %3 : vector<8x1024xf32>
    %c0_3 = arith.constant 0 : index
    %c0_4 = arith.constant 0 : index
    %5 = vector.load %arg3[%c0_3, %c0_4] : memref<1x1024xf32, #tpu.memory_space<vmem>>, vector<1x1024xf32>
    %6 = vector.broadcast %5 : vector<1x1024xf32> to vector<8x1024xf32>
    %7 = arith.mulf %4, %6 : vector<8x1024xf32>
    %8 = math.absf %7 : vector<8x1024xf32>
    %cst = arith.constant 0.111111112 : f32
    %9 = vector.broadcast %cst : f32 to vector<8x1024xf32>
    %10 = arith.cmpf olt, %8, %9 : vector<8x1024xf32>
    %11 = arith.mulf %8, %8 : vector<8x1024xf32>
    %cst_5 = arith.constant 4.500000e+00 : f32
    %12 = vector.broadcast %cst_5 : f32 to vector<8x1024xf32>
    %13 = arith.mulf %11, %12 : vector<8x1024xf32>
    %cst_6 = arith.constant 0.055555556 : f32
    %14 = vector.broadcast %cst_6 : f32 to vector<8x1024xf32>
    %15 = arith.subf %8, %14 : vector<8x1024xf32>
    %16 = arith.select %10, %13, %15 : vector<8x1024xi1>, vector<8x1024xf32>
    %c0_7 = arith.constant 0 : index
    %c0_8 = arith.constant 0 : index
    %17 = vector.load %arg4[%c0_7, %c0_8] : memref<8x128xf32, #tpu.memory_space<vmem>>, vector<8x128xf32>
    %c0_9 = arith.constant 0 : index
    %c0_10 = arith.constant 0 : index
    %18 = vector.load %arg5[%c0_9, %c0_10] : memref<128x1024xf32, #tpu.memory_space<vmem>>, vector<128x1024xf32>
    %cst_11 = arith.constant dense<0.000000e+00> : vector<8x1024xf32>
    %19 = tpu.matmul %17, %18, %cst_11 {dimension_numbers = #tpu.dot_dimension_numbers<[1], [0], [0], [1], [0, 0, 1, 1], [], []>} : vector<8x128xf32>, vector<128x1024xf32>, vector<8x1024xf32> -> vector<8x1024xf32>
    %20 = arith.mulf %16, %19 : vector<8x1024xf32>
    %c0_12 = arith.constant 0 : index
    %c0_13 = arith.constant 0 : index
    %21 = vector.load %arg6[%c0_12, %c0_13] : memref<8x1024xf32, #tpu.memory_space<vmem>>, vector<8x1024xf32>
    tpu.vector_store %arg6[%c0_12, %c0_13], %20 {strides = array<i32>} : memref<8x1024xf32, #tpu.memory_space<vmem>>, vector<8x1024xf32>,
    return
  }
  func.func @transform_0(%arg0: i32) -> (i32, i32) {
    %c0_i32 = arith.constant 0 : i32
    %c0_i32_0 = arith.constant 0 : i32
    return %arg0, %c0_i32 : i32, i32
  }
  func.func @transform_1(%arg0: i32) -> (i32, i32) {
    %c0_i32 = arith.constant 0 : i32
    %c0_i32_0 = arith.constant 0 : i32
    return %arg0, %c0_i32 : i32, i32
  }
  func.func @transform_2(%arg0: i32) -> (i32, i32) {
    %c0_i32 = arith.constant 0 : i32
    %c0_i32_0 = arith.constant 0 : i32
    %c0_i32_1 = arith.constant 0 : i32
    return %c0_i32, %c0_i32_0 : i32, i32
  }
  func.func @transform_3(%arg0: i32) -> (i32, i32) {
    %c0_i32 = arith.constant 0 : i32
    %c0_i32_0 = arith.constant 0 : i32
    return %arg0, %c0_i32 : i32, i32
  }
  func.func @transform_4(%arg0: i32) -> (i32, i32) {
    %c0_i32 = arith.constant 0 : i32
    %c0_i32_0 = arith.constant 0 : i32
    %c0_i32_1 = arith.constant 0 : i32
    return %c0_i32, %c0_i32_0 : i32, i32
  }
  func.func @transform_5(%arg0: i32) -> (i32, i32) {
    %c0_i32 = arith.constant 0 : i32
    %c0_i32_0 = arith.constant 0 : i32
    return %arg0, %c0_i32 : i32, i32
  }
}

</mosaic_0001>

<bundles_post_ra>
// kernel: tpu_custom_call.1
= control target key start
LH: loop header
LB: loop body
LE: loop exit
PB: predicated region body
PF: predicated region fallthrough
CT: control target
= control target key end

     0   :  { %10 = vsyncpa [#allocation3], 0  ;;  %s1054_s0 = inlined_call_operand.hbm [shape: f32[8,1024], index: 0, kind: input, shape index: {}]   ;;  %s1055_s1 = inlined_call_operand.hbm [shape: f32[8,1024], index: 1, kind: input, shape index: {}]   ;;  %s1056_s2 = inlined_call_operand.hbm [shape: f32[1,1024], index: 2, kind: input, shape index: {}]   ;;  %s1057_s3 = inlined_call_operand.vmem [shape: f32[8,128], index: 3, kind: input, shape index: {}]   ;;  %s1058_s4 = inlined_call_operand.hbm [shape: f32[128,1024], index: 4, kind: input, shape index: {}]   ;;  %s1059_s5 = inlined_call_operand.hbm [shape: f32[8,1024], index: 5, kind: output, shape index: {}]  }
   0x1   :  { %11 = vsyncpa [#allocation6], 0 }
   0x2   :  { %12 = vsyncpa [#allocation9], 0 }
   0x3   :  { %13 = vsyncpa [#allocation4], 0  ;;  %s916_s18 = smov [#allocation5]   ;;  %s917_s20 = smov [#allocation2]  }
   0x4   :  { %s30_s19 = sshll.u32 %s916_s18, 4  ;;  %s20_s21 = sshll.u32 %s917_s20, 4  ;;  %s31_s19 = int_to_ptr.vmem [resolvable:$true] %s30_s19  ;;  %s21_s21 = int_to_ptr.vmem [resolvable:$true] %s20_s21 }
   0x5   :  { %s798_s24 = scalar_lea.hbm %s1055_s1, 1024 }
   0x6   :  { %p799_p0 = scmp.ne.s32.totalorder %s1055_s1, %s798_s24  ;;  %p802_p1 = scmp.lt.u32.totalorder %s798_s24, %s1055_s1 }
   0x8   :  { %p804_p2 = pnand %p802_p1, %p799_p0 }
   0xa   :  { %807 = shalt.err (!%p804_p2)
}
   0xb   :  { %s808_s29 = scalar_lea.vmem %s31_s19, 1024  ;;  %p813_p4 = scmp.lt.s32.totalorder %s31_s19, %s31_s19 }
   0xc   :  { %p809_p3 = scmp.ne.s32.totalorder %s31_s19, %s808_s29  ;;  %p814_p5 = scmp.lt.s32.totalorder %s808_s29, %s808_s29 }
   0xe   :  { %p815_p6 = por %p814_p5, %p813_p4 }
  0x10   :  { %p816_p7 = pnand %p815_p6, %p809_p3 }
  0x12   :  { %819 = shalt.err (!%p816_p7)
}
  0x13   :  { %33 = dma.hbm_to_vmem [thread:$0]  %s1055_s1, 1024, %s31_s19, [#allocation6]  }
  0x14   :  { %s820_s9 = scalar_lea.hbm %s1054_s0, 1024 }
  0x15   :  { %p821_p8 = scmp.ne.s32.totalorder %s1054_s0, %s820_s9  ;;  %p824_p9 = scmp.lt.u32.totalorder %s820_s9, %s1054_s0 }
  0x17   :  { %p826_p10 = pnand %p824_p9, %p821_p8 }
  0x19   :  { %829 = shalt.err (!%p826_p10)
}
  0x1a   :  { %s830_s14 = scalar_lea.vmem %s21_s21, 1024  ;;  %p835_p12 = scmp.lt.s32.totalorder %s21_s21, %s21_s21 }
  0x1b   :  { %p831_p11 = scmp.ne.s32.totalorder %s21_s21, %s830_s14  ;;  %p836_p13 = scmp.lt.s32.totalorder %s830_s14, %s830_s14 }
  0x1d   :  { %p837_p0 = por %p836_p13, %p835_p12 }
  0x1f   :  { %p838_p1 = pnand %p837_p0, %p831_p11 }
  0x21   :  { %841 = shalt.err (!%p838_p1)
}
  0x22   :  { %23 = dma.hbm_to_vmem [thread:$0]  %s1054_s0, 1024, %s21_s21, [#allocation3]  }
  0x23   :  { %s918_s16 = smov [#allocation7]   ;;  %s919_s18 = smov [#allocation8]  }
  0x24   :  { %s40_s17 = sshll.u32 %s918_s16, 4  ;;  %s51_s19 = sshll.u32 %s919_s18, 4  ;;  %s41_s17 = int_to_ptr.vmem [resolvable:$true] %s40_s17  ;;  %s978_s19 = int_to_ptr.vmem [resolvable:$true] %s51_s19 }
  0x25   :  { %s842_s23 = scalar_lea.hbm %s1056_s2, 128 }
  0x26   :  { %p843_p2 = scmp.ne.s32.totalorder %s1056_s2, %s842_s23  ;;  %p846_p3 = scmp.lt.u32.totalorder %s842_s23, %s1056_s2 }
  0x28   :  { %p848_p4 = pnand %p846_p3, %p843_p2 }
  0x2a   :  { %851 = shalt.err (!%p848_p4)
}
  0x2b   :  { %s852_s0 = scalar_lea.vmem %s41_s17, 128  ;;  %p857_p6 = scmp.lt.s32.totalorder %s41_s17, %s41_s17 }
  0x2c   :  { %p853_p5 = scmp.ne.s32.totalorder %s41_s17, %s852_s0  ;;  %p858_p7 = scmp.lt.s32.totalorder %s852_s0, %s852_s0 }
  0x2e   :  { %p859_p8 = por %p858_p7, %p857_p6 }
  0x30   :  { %p860_p9 = pnand %p859_p8, %p853_p5 }
  0x32   :  { %863 = shalt.err (!%p860_p9)
}
  0x33   :  { %43 = dma.hbm_to_vmem [thread:$0]  %s1056_s2, 128, %s41_s17, [#allocation6]  }
  0x34   :  { %s864_s6 = scalar_lea.hbm %s1058_s4, 16384 }
  0x35   :  { %p865_p10 = scmp.ne.s32.totalorder %s1058_s4, %s864_s6  ;;  %p868_p11 = scmp.lt.u32.totalorder %s864_s6, %s1058_s4 }
  0x37   :  { %p870_p12 = pnand %p868_p11, %p865_p10 }
  0x39   :  { %873 = shalt.err (!%p870_p12)
}
  0x3a   :  { %s874_s11 = scalar_lea.vmem %s978_s19, 16384  ;;  %p879_p0 = scmp.lt.s32.totalorder %s978_s19, %s978_s19 }
  0x3b   :  { %p875_p13 = scmp.ne.s32.totalorder %s978_s19, %s874_s11  ;;  %p880_p1 = scmp.lt.s32.totalorder %s874_s11, %s874_s11 }
  0x3d   :  { %p881_p2 = por %p880_p1, %p879_p0 }
  0x3f   :  { %p882_p3 = pnand %p881_p2, %p875_p13 }
  0x41   :  { %885 = shalt.err (!%p882_p3)
}
  0x42   :  { %s920_s2 = smov 1024   ;;  %s921_s12 = smov 64  }
  0x43   :  { %57 = dma.hbm_to_vmem [thread:$0]  %s1058_s4, 16384, %s978_s19, [#allocation9], %s920_s2, %s920_s2, %s921_s12  }
  0x44   :  { %908 = dma.done.wait [#allocation3], 1024  }
  0x45   :  { %909 = vsyncadd [#allocation3], 4294966272 }
  0x46   :  { %910 = dma.done.wait [#allocation6], 1152  }
  0x47   :  { %911 = vsyncadd [#allocation6], 4294966144 }
  0x48   :  { %912 = dma.done.wait [#allocation9], 16384  }
  0x49   :  { %913 = vsyncadd [#allocation9], 4294950912  ;;  %v922_v0 = vmov 0.0   ;;  %v210_v1 = vld [vmem:[#allocation8 + $0x8] sm:$0xff]  ;;  %v212_v3 = vld [vmem:[#allocation8 + $0x18] sm:$0xff] }
  0x4a   :  { %401 = vmatprep.mubr.f32.mxu0 %v922_v0  ;;  %472 = vmatprep.mubr.f32.mxu1 %v922_v0  ;;  %v218_v2 = vld [vmem:[#allocation8 + $0x48] sm:$0xff]  ;;  %v220_v5 = vld [vmem:[#allocation8 + $0x58] sm:$0xff]  ;;  %v209_v6 = vld [vmem:[#allocation8] sm:$0xff] }
  0x4b   :  { %v662_v4 = vpack.c.bf16 %v218_v2, %v210_v1  ;;  %v217_v7 = vld [vmem:[#allocation8 + $0x40] sm:$0xff]  ;;  %v694_v8 = vpack.c.bf16 %v220_v5, %v212_v3  ;;  %v211_v10 = vld [vmem:[#allocation8 + $0x10] sm:$0xff]  ;;  %v226_v12 = vld [vmem:[#allocation8 + $0x88] sm:$0xff] }
  0x4c   :  { %v664_v9 = vpack.c.bf16 %v217_v7, %v209_v6  ;;  %v219_v11 = vld [vmem:[#allocation8 + $0x50] sm:$0xff]  ;;  %v234_v14 = vld [vmem:[#allocation8 + $0xc8] sm:$0xff]  ;;  %v228_v15 = vld [vmem:[#allocation8 + $0x98] sm:$0xff] }
  0x4d   :  { %663 = vmatprep.subr.bf16.mxu0 %v662_v4  ;;  %v696_v13 = vpack.c.bf16 %v219_v11, %v211_v10  ;;  %v236_v16 = vld [vmem:[#allocation8 + $0xd8] sm:$0xff]  ;;  %695 = vmatprep.subr.bf16.mxu1 %v694_v8  ;;  %v666_v17 = vpack.c.bf16 %v234_v14, %v226_v12  ;;  %v225_v19 = vld [vmem:[#allocation8 + $0x80] sm:$0xff]  ;;  %v227_v21 = vld [vmem:[#allocation8 + $0x90] sm:$0xff] }
  0x4e   :  { %665 = vmatpush1.bf16.msra.mxu0 %v664_v9  ;;  %v698_v18 = vpack.c.bf16 %v236_v16, %v228_v15  ;;  %v233_v20 = vld [vmem:[#allocation8 + $0xc0] sm:$0xff]  ;;  %v235_v23 = vld [vmem:[#allocation8 + $0xd0] sm:$0xff]  ;;  %v242_v24 = vld [vmem:[#allocation8 + $0x108] sm:$0xff] }
  0x4f   :  { %697 = vmatpush1.bf16.msra.mxu1 %v696_v13  ;;  %v668_v22 = vpack.c.bf16 %v233_v20, %v225_v19  ;;  %v250_v25 = vld [vmem:[#allocation8 + $0x148] sm:$0xff]  ;;  %667 = vmatprep.subr.bf16.mxu0 %v666_v17  ;;  %v700_v26 = vpack.c.bf16 %v235_v23, %v227_v21  ;;  %v244_v28 = vld [vmem:[#allocation8 + $0x118] sm:$0xff]  ;;  %v241_v30 = vld [vmem:[#allocation8 + $0x100] sm:$0xff] }
  0x50   :  { %699 = vmatprep.subr.bf16.mxu1 %v698_v18  ;;  %v670_v27 = vpack.c.bf16 %v250_v25, %v242_v24  ;;  %v252_v29 = vld [vmem:[#allocation8 + $0x158] sm:$0xff]  ;;  %v249_v32 = vld [vmem:[#allocation8 + $0x140] sm:$0xff]  ;;  %v243_v33 = vld [vmem:[#allocation8 + $0x110] sm:$0xff] }
  0x51   :  { %v702_v31 = vpack.c.bf16 %v252_v29, %v244_v28  ;;  %v251_v34 = vld [vmem:[#allocation8 + $0x150] sm:$0xff]  ;;  %v672_v35 = vpack.c.bf16 %v249_v32, %v241_v30  ;;  %v258_v36 = vld [vmem:[#allocation8 + $0x188] sm:$0xff]  ;;  %v260_v38 = vld [vmem:[#allocation8 + $0x198] sm:$0xff] }
  0x52   :  { %669 = vmatpush1.bf16.msra.mxu0 %v668_v22  ;;  %v266_v37 = vld [vmem:[#allocation8 + $0x1c8] sm:$0xff]  ;;  %v704_v39 = vpack.c.bf16 %v251_v34, %v243_v33  ;;  %v268_v41 = vld [vmem:[#allocation8 + $0x1d8] sm:$0xff]  ;;  %v257_v42 = vld [vmem:[#allocation8 + $0x180] sm:$0xff] }
  0x53   :  { %701 = vmatpush1.bf16.msra.mxu1 %v700_v26  ;;  %671 = vmatprep.subr.bf16.mxu0 %v670_v27  ;;  %v674_v40 = vpack.c.bf16 %v266_v37, %v258_v36  ;;  %v265_v43 = vld [vmem:[#allocation8 + $0x1c0] sm:$0xff]  ;;  %v706_v44 = vpack.c.bf16 %v268_v41, %v260_v38  ;;  %v259_v45 = vld [vmem:[#allocation8 + $0x190] sm:$0xff]  ;;  %v274_v47 = vld [vmem:[#allocation8 + $0x208] sm:$0xff] }
  0x54   :  { %703 = vmatprep.subr.bf16.mxu1 %v702_v31  ;;  %v267_v46 = vld [vmem:[#allocation8 + $0x1d0] sm:$0xff]  ;;  %v282_v48 = vld [vmem:[#allocation8 + $0x248] sm:$0xff]  ;;  %v276_v49 = vld [vmem:[#allocation8 + $0x218] sm:$0xff]  ;;  %v676_v51 = vpack.c.bf16 %v265_v43, %v257_v42 }
  0x55   :  { %v284_v50 = vld [vmem:[#allocation8 + $0x258] sm:$0xff]  ;;  %v708_v52 = vpack.c.bf16 %v267_v46, %v259_v45  ;;  %v678_v53 = vpack.c.bf16 %v282_v48, %v274_v47  ;;  %v273_v54 = vld [vmem:[#allocation8 + $0x200] sm:$0xff]  ;;  %v275_v56 = vld [vmem:[#allocation8 + $0x210] sm:$0xff] }
  0x56   :  { %673 = vmatpush1.bf16.msra.mxu0 %v672_v35  ;;  %v281_v55 = vld [vmem:[#allocation8 + $0x240] sm:$0xff]  ;;  %v710_v57 = vpack.c.bf16 %v284_v50, %v276_v49  ;;  %v283_v58 = vld [vmem:[#allocation8 + $0x250] sm:$0xff]  ;;  %v290_v59 = vld [vmem:[#allocation8 + $0x288] sm:$0xff] }
  0x57   :  { %705 = vmatpush1.bf16.msra.mxu1 %v704_v39  ;;  %675 = vmatprep.subr.bf16.mxu0 %v674_v40  ;;  %v298_v60 = vld [vmem:[#allocation8 + $0x2c8] sm:$0xff]  ;;  %v292_v61 = vld [vmem:[#allocation8 + $0x298] sm:$0xff]  ;;  %v680_v63 = vpack.c.bf16 %v281_v55, %v273_v54  ;;  %v712_v1 = vpack.c.bf16 %v283_v58, %v275_v56  ;;  %v289_v3 = vld [vmem:[#allocation8 + $0x280] sm:$0xff] }
  0x58   :  { %707 = vmatprep.subr.bf16.mxu1 %v706_v44  ;;  %v300_v62 = vld [vmem:[#allocation8 + $0x2d8] sm:$0xff]  ;;  %v682_v2 = vpack.c.bf16 %v298_v60, %v290_v59  ;;  %v297_v4 = vld [vmem:[#allocation8 + $0x2c0] sm:$0xff]  ;;  %v291_v5 = vld [vmem:[#allocation8 + $0x290] sm:$0xff] }
  0x59   :  { %v714_v6 = vpack.c.bf16 %v300_v62, %v292_v61  ;;  %v299_v7 = vld [vmem:[#allocation8 + $0x2d0] sm:$0xff]  ;;  %v306_v8 = vld [vmem:[#allocation8 + $0x308] sm:$0xff]  ;;  %v308_v10 = vld [vmem:[#allocation8 + $0x318] sm:$0xff]  ;;  %v684_v12 = vpack.c.bf16 %v297_v4, %v289_v3 }
  0x5a   :  { %677 = vmatpush1.bf16.msra.mxu0 %v676_v51  ;;  %v314_v9 = vld [vmem:[#allocation8 + $0x348] sm:$0xff]  ;;  %v316_v11 = vld [vmem:[#allocation8 + $0x358] sm:$0xff]  ;;  %v716_v13 = vpack.c.bf16 %v299_v7, %v291_v5  ;;  %v305_v15 = vld [vmem:[#allocation8 + $0x300] sm:$0xff] }
  0x5b   :  { %709 = vmatpush1.bf16.msra.mxu1 %v708_v52  ;;  %679 = vmatprep.subr.bf16.mxu0 %v678_v53  ;;  %v686_v14 = vpack.c.bf16 %v314_v9, %v306_v8  ;;  %v313_v16 = vld [vmem:[#allocation8 + $0x340] sm:$0xff]  ;;  %v307_v17 = vld [vmem:[#allocation8 + $0x310] sm:$0xff]  ;;  %v718_v18 = vpack.c.bf16 %v316_v11, %v308_v10  ;;  %v322_v20 = vld [vmem:[#allocation8 + $0x388] sm:$0xff] }
  0x5c   :  { %711 = vmatprep.subr.bf16.mxu1 %v710_v57  ;;  %v315_v19 = vld [vmem:[#allocation8 + $0x350] sm:$0xff]  ;;  %v330_v21 = vld [vmem:[#allocation8 + $0x3c8] sm:$0xff]  ;;  %v324_v22 = vld [vmem:[#allocation8 + $0x398] sm:$0xff]  ;;  %v688_v24 = vpack.c.bf16 %v313_v16, %v305_v15 }
  0x5d   :  { %v332_v23 = vld [vmem:[#allocation8 + $0x3d8] sm:$0xff]  ;;  %v720_v25 = vpack.c.bf16 %v315_v19, %v307_v17  ;;  %v690_v26 = vpack.c.bf16 %v330_v21, %v322_v20  ;;  %v321_v27 = vld [vmem:[#allocation8 + $0x380] sm:$0xff]  ;;  %v323_v29 = vld [vmem:[#allocation8 + $0x390] sm:$0xff] }
  0x5e   :  { %681 = vmatpush1.bf16.msra.mxu0 %v680_v63  ;;  %v329_v28 = vld [vmem:[#allocation8 + $0x3c0] sm:$0xff]  ;;  %v722_v30 = vpack.c.bf16 %v332_v23, %v324_v22  ;;  %v331_v31 = vld [vmem:[#allocation8 + $0x3d0] sm:$0xff]  ;;  %v214_v32 = vld [vmem:[#allocation8 + $0x28] sm:$0xff] }
  0x5f   :  { %713 = vmatpush1.bf16.msra.mxu1 %v712_v1  ;;  %683 = vmatprep.subr.bf16.mxu0 %v682_v2  ;;  %v222_v33 = vld [vmem:[#allocation8 + $0x68] sm:$0xff]  ;;  %v216_v34 = vld [vmem:[#allocation8 + $0x38] sm:$0xff]  ;;  %v692_v36 = vpack.c.bf16 %v329_v28, %v321_v27  ;;  %v724_v37 = vpack.c.bf16 %v331_v31, %v323_v29  ;;  %v213_v39 = vld [vmem:[#allocation8 + $0x20] sm:$0xff] }
  0x60   :  { %715 = vmatprep.subr.bf16.mxu1 %v714_v6  ;;  %v224_v35 = vld [vmem:[#allocation8 + $0x78] sm:$0xff]  ;;  %v726_v38 = vpack.c.bf16 %v222_v33, %v214_v32  ;;  %v221_v40 = vld [vmem:[#allocation8 + $0x60] sm:$0xff]  ;;  %v215_v41 = vld [vmem:[#allocation8 + $0x30] sm:$0xff] }
  0x61   :  { %v758_v42 = vpack.c.bf16 %v224_v35, %v216_v34  ;;  %v223_v43 = vld [vmem:[#allocation8 + $0x70] sm:$0xff]  ;;  %v230_v44 = vld [vmem:[#allocation8 + $0xa8] sm:$0xff]  ;;  %v232_v46 = vld [vmem:[#allocation8 + $0xb8] sm:$0xff]  ;;  %v728_v49 = vpack.c.bf16 %v221_v40, %v213_v39 }
  0x62   :  { %685 = vmatpush1.bf16.msra.mxu0 %v684_v12  ;;  %v238_v45 = vld [vmem:[#allocation8 + $0xe8] sm:$0xff]  ;;  %v240_v47 = vld [vmem:[#allocation8 + $0xf8] sm:$0xff]  ;;  %v760_v50 = vpack.c.bf16 %v223_v43, %v215_v41  ;;  %v229_v52 = vld [vmem:[#allocation8 + $0xa0] sm:$0xff] }
  0x63   :  { %717 = vmatpush1.bf16.msra.mxu1 %v716_v13  ;;  %687 = vmatprep.subr.bf16.mxu0 %v686_v14  ;;  %v1014_v48 = vld [vmem:[%s1057_s3] sm:$0xff]  ;;  %v730_v51 = vpack.c.bf16 %v238_v45, %v230_v44  ;;  %v237_v53 = vld [vmem:[#allocation8 + $0xe0] sm:$0xff]  ;;  %v231_v54 = vld [vmem:[#allocation8 + $0xb0] sm:$0xff]  ;;  %v762_v55 = vpack.c.bf16 %v240_v47, %v232_v46  ;;  %s923_s3 = smov [#allocation10]  }
  0x64   :  { %719 = vmatprep.subr.bf16.mxu1 %v718_v18  ;;  %v239_v56 = vld [vmem:[#allocation8 + $0xf0] sm:$0xff]  ;;  %v246_v57 = vld [vmem:[#allocation8 + $0x128] sm:$0xff]  ;;  %v248_v59 = vld [vmem:[#allocation8 + $0x138] sm:$0xff]  ;;  %v732_v61 = vpack.c.bf16 %v237_v53, %v229_v52  ;;  %s643_s15 = sshll.u32 %s923_s3, 4  ;;  %s644_s15 = int_to_ptr.vmem [resolvable:$true] %s643_s15 }
  0x65   :  { %v254_v58 = vld [vmem:[#allocation8 + $0x168] sm:$0xff]  ;;  %v256_v60 = vld [vmem:[#allocation8 + $0x178] sm:$0xff]  ;;  %v764_v62 = vpack.c.bf16 %v239_v56, %v231_v54  ;;  %v245_v1 = vld [vmem:[#allocation8 + $0x120] sm:$0xff]  ;;  %s886_s16 = scalar_lea.vmem %s644_s15, 1024  ;;  %p891_p5 = scmp.lt.s32.totalorder %s644_s15, %s644_s15 }
  0x66   :  { %689 = vmatpush1.bf16.msra.mxu0 %v688_v24  ;;  %v734_v63 = vpack.c.bf16 %v254_v58, %v246_v57  ;;  %v253_v2 = vld [vmem:[#allocation8 + $0x160] sm:$0xff]  ;;  %v247_v3 = vld [vmem:[#allocation8 + $0x130] sm:$0xff]  ;;  %v766_v4 = vpack.c.bf16 %v256_v60, %v248_v59  ;;  %v262_v6 = vld [vmem:[#allocation8 + $0x1a8] sm:$0xff]  ;;  %p887_p4 = scmp.ne.s32.totalorder %s644_s15, %s886_s16  ;;  %p892_p6 = scmp.lt.s32.totalorder %s886_s16, %s886_s16 }
  0x67   :  { %721 = vmatpush1.bf16.msra.mxu1 %v720_v25  ;;  %691 = vmatprep.subr.bf16.mxu0 %v690_v26  ;;  %v255_v5 = vld [vmem:[#allocation8 + $0x170] sm:$0xff]  ;;  %v270_v7 = vld [vmem:[#allocation8 + $0x1e8] sm:$0xff]  ;;  %v264_v8 = vld [vmem:[#allocation8 + $0x1b8] sm:$0xff]  ;;  %v736_v10 = vpack.c.bf16 %v253_v2, %v245_v1 }
  0x68   :  { %723 = vmatprep.subr.bf16.mxu1 %v722_v30  ;;  %v272_v9 = vld [vmem:[#allocation8 + $0x1f8] sm:$0xff]  ;;  %v768_v11 = vpack.c.bf16 %v255_v5, %v247_v3  ;;  %v738_v12 = vpack.c.bf16 %v270_v7, %v262_v6  ;;  %v261_v13 = vld [vmem:[#allocation8 + $0x1a0] sm:$0xff]  ;;  %v263_v15 = vld [vmem:[#allocation8 + $0x1b0] sm:$0xff]  ;;  %v112_v5 = vlaneseq  ;;  %p893_p7 = por %p892_p6, %p891_p5 }
  0x69   :  { %v269_v14 = vld [vmem:[#allocation8 + $0x1e0] sm:$0xff]  ;;  %v770_v16 = vpack.c.bf16 %v272_v9, %v264_v8  ;;  %v271_v17 = vld [vmem:[#allocation8 + $0x1f0] sm:$0xff]  ;;  %v278_v18 = vld [vmem:[#allocation8 + $0x228] sm:$0xff] }
  0x6a   :  { %693 = vmatpush1.bf16.msra.mxu0 %v692_v36  ;;  %v286_v19 = vld [vmem:[#allocation8 + $0x268] sm:$0xff]  ;;  %v280_v20 = vld [vmem:[#allocation8 + $0x238] sm:$0xff]  ;;  %v740_v22 = vpack.c.bf16 %v269_v14, %v261_v13  ;;  %v277_v24 = vld [vmem:[#allocation8 + $0x220] sm:$0xff]  ;;  %v1022_v7 = vshrl.u32 %v112_v5, 7  ;;  %p894_p8 = pnand %p893_p7, %p887_p4 }
  0x6b   :  { %725 = vmatpush1.bf16.msra.mxu1 %v724_v37  ;;  %727 = vmatprep.subr.bf16.mxu0 %v726_v38  ;;  %v288_v21 = vld [vmem:[#allocation8 + $0x278] sm:$0xff]  ;;  %v742_v23 = vpack.c.bf16 %v286_v19, %v278_v18  ;;  %v285_v25 = vld [vmem:[#allocation8 + $0x260] sm:$0xff]  ;;  %v279_v26 = vld [vmem:[#allocation8 + $0x230] sm:$0xff] }
  0x6c   :  { %759 = vmatprep.subr.bf16.mxu1 %v758_v42  ;;  %v774_v27 = vpack.c.bf16 %v288_v21, %v280_v20  ;;  %v287_v28 = vld [vmem:[#allocation8 + $0x270] sm:$0xff]  ;;  %v294_v29 = vld [vmem:[#allocation8 + $0x2a8] sm:$0xff]  ;;  %v296_v31 = vld [vmem:[#allocation8 + $0x2b8] sm:$0xff]  ;;  %v744_v33 = vpack.c.bf16 %v285_v25, %v277_v24  ;;  %v114_v14 = vsub.s32 0, %v1022_v7  ;;  %v118_v18 = vsub.s32 1, %v1022_v7 }
  0x6d   :  { %402 = vmatmul.mubr.f32.vlgmr.msra.gmra.mrb[0].mxu0 %v1014_v48  ;;  %v302_v30 = vld [vmem:[#allocation8 + $0x2e8] sm:$0xff]  ;;  %v304_v32 = vld [vmem:[#allocation8 + $0x2f8] sm:$0xff]  ;;  %v776_v34 = vpack.c.bf16 %v287_v28, %v279_v26  ;;  %v293_v36 = vld [vmem:[#allocation8 + $0x2a0] sm:$0xff]  ;;  %v126_v21 = vsub.s32 3, %v1022_v7 }
  0x6e   :  { %473 = vmatmul.mubr.f32.vlgmr.msra.gmra.mrb[0].mxu1 %v1014_v48  ;;  %729 = vmatpush1.bf16.msra.mxu0 %v728_v49  ;;  %v746_v35 = vpack.c.bf16 %v302_v30, %v294_v29  ;;  %v301_v37 = vld [vmem:[#allocation8 + $0x2e0] sm:$0xff]  ;;  %v295_v38 = vld [vmem:[#allocation8 + $0x2b0] sm:$0xff]  ;;  %v778_v39 = vpack.c.bf16 %v304_v32, %v296_v31  ;;  %v310_v41 = vld [vmem:[#allocation8 + $0x328] sm:$0xff] }
  0x6f   :  { %761 = vmatpush1.bf16.msra.mxu1 %v760_v50  ;;  %731 = vmatprep.subr.bf16.mxu0 %v730_v51  ;;  %v303_v40 = vld [vmem:[#allocation8 + $0x2f0] sm:$0xff]  ;;  %v318_v42 = vld [vmem:[#allocation8 + $0x368] sm:$0xff]  ;;  %v312_v43 = vld [vmem:[#allocation8 + $0x338] sm:$0xff]  ;;  %v748_v45 = vpack.c.bf16 %v301_v37, %v293_v36 }
  0x70   :  { %763 = vmatprep.subr.bf16.mxu1 %v762_v55  ;;  %543 = vmatprep.mubr.f32.mxu0 %v922_v0  ;;  %v320_v44 = vld [vmem:[#allocation8 + $0x378] sm:$0xff]  ;;  %v780_v46 = vpack.c.bf16 %v303_v40, %v295_v38  ;;  %v750_v47 = vpack.c.bf16 %v318_v42, %v310_v41  ;;  %v309_v49 = vld [vmem:[#allocation8 + $0x320] sm:$0xff]  ;;  %v311_v51 = vld [vmem:[#allocation8 + $0x330] sm:$0xff] }
  0x71   :  { %614 = vmatprep.mubr.f32.mxu1 %v922_v0  ;;  %v772_v0 = vpack.c.bf16 %v271_v17, %v263_v15  ;;  %v317_v50 = vld [vmem:[#allocation8 + $0x360] sm:$0xff]  ;;  %v782_v52 = vpack.c.bf16 %v320_v44, %v312_v43  ;;  %v319_v53 = vld [vmem:[#allocation8 + $0x370] sm:$0xff]  ;;  %v326_v54 = vld [vmem:[#allocation8 + $0x3a8] sm:$0xff] }
  0x72   :  { %733 = vmatpush1.bf16.msra.mxu0 %v732_v61  ;;  %v334_v55 = vld [vmem:[#allocation8 + $0x3e8] sm:$0xff]  ;;  %v328_v56 = vld [vmem:[#allocation8 + $0x3b8] sm:$0xff]  ;;  %v752_v58 = vpack.c.bf16 %v317_v50, %v309_v49  ;;  %v784_v59 = vpack.c.bf16 %v319_v53, %v311_v51  ;;  %v325_v61 = vld [vmem:[#allocation8 + $0x3a0] sm:$0xff] }
  0x73   :  { %765 = vmatpush1.bf16.msra.mxu1 %v764_v62  ;;  %735 = vmatprep.subr.bf16.mxu0 %v734_v63  ;;  %v336_v57 = vld [vmem:[#allocation8 + $0x3f8] sm:$0xff]  ;;  %v754_v60 = vpack.c.bf16 %v334_v55, %v326_v54  ;;  %v333_v62 = vld [vmem:[#allocation8 + $0x3e0] sm:$0xff]  ;;  %v327_v1 = vld [vmem:[#allocation8 + $0x3b0] sm:$0xff] }
  0x74   :  { %767 = vmatprep.subr.bf16.mxu1 %v766_v4  ;;  %v786_v63 = vpack.c.bf16 %v336_v57, %v328_v56  ;;  %v335_v2 = vld [vmem:[#allocation8 + $0x3f0] sm:$0xff]  ;;  %v756_v3 = vpack.c.bf16 %v333_v62, %v325_v61  ;;  %v78_v6 = vld [vmem:[#allocation5] sm:$0xff]  ;;  %v80_v8 = vld [vmem:[#allocation5 + $0x10] sm:$0xff] }
  0x75   :  { %v788_v4 = vpack.c.bf16 %v335_v2, %v327_v1  ;;  %v79_v9 = vld [vmem:[#allocation5 + $0x8] sm:$0xff]  ;;  %vm86_vm0 = vcmp.ne.f32.partialorder %v78_v6, %v78_v6  ;;  %vm88_vm1 = vcmp.ne.f32.partialorder %v80_v8, %v80_v8  ;;  %v73_v15 = vld [vmem:[#allocation2 + $0x18] sm:$0xff]  ;;  %v1025_v17 = vld [vmem:[#allocation7] sm:$0xff] }
  0x76   :  { %737 = vmatpush1.bf16.msra.mxu0 %v736_v10  ;;  %v81_v10 = vld [vmem:[#allocation5 + $0x18] sm:$0xff]  ;;  %v71_v13 = vld [vmem:[#allocation2 + $0x8] sm:$0xff]  ;;  %vm87_vm2 = vcmp.ne.f32.partialorder %v79_v9, %v79_v9  ;;  %v127_v29 = vrot.slane %v1025_v17, %v126_v21  ;;  %v76_v5 = vld [vmem:[#allocation2 + $0x30] sm:$0xff] }
  0x77   :  { %769 = vmatpush1.bf16.msra.mxu1 %v768_v11  ;;  %739 = vmatprep.subr.bf16.mxu0 %v738_v12  ;;  %v70_v11 = vld [vmem:[#allocation2] sm:$0xff]  ;;  %v72_v12 = vld [vmem:[#allocation2 + $0x10] sm:$0xff]  ;;  %vm89_vm3 = vcmp.ne.f32.partialorder %v81_v10, %v81_v10  ;;  %v95_v20 = vsel %vm87_vm2, %v71_v13, %v79_v9  ;;  %v83_v1 = vld [vmem:[#allocation5 + $0x28] sm:$0xff] }
  0x78   :  { %771 = vmatprep.subr.bf16.mxu1 %v770_v16  ;;  %v94_v16 = vsel %vm86_vm0, %v70_v11, %v78_v6  ;;  %v96_v19 = vsel %vm88_vm1, %v72_v12, %v80_v8  ;;  %v103_v26 = vsub.f32 %v71_v13, %v95_v20  ;;  %v75_v6 = vld [vmem:[#allocation2 + $0x28] sm:$0xff]  ;;  %vm91_vm10 = vcmp.ne.f32.partialorder %v83_v1, %v83_v1  ;;  %v77_v9 = vld [vmem:[#allocation2 + $0x38] sm:$0xff] }
  0x79   :  { %v104_v24 = vsub.f32 %v72_v12, %v96_v19  ;;  %v130_v8 = vsub.s32 4, %v1022_v7  ;;  %v134_v12 = vsub.s32 5, %v1022_v7 }
  0x7a   :  { %741 = vmatpush1.bf16.msra.mxu0 %v740_v22  ;;  %v97_v22 = vsel %vm89_vm3, %v73_v15, %v81_v10 }
  0x7b   :  { %773 = vmatpush1.bf16.msra.mxu1 %v772_v0  ;;  %743 = vmatprep.subr.bf16.mxu0 %v742_v23  ;;  %v102_v0 = vsub.f32 %v70_v11, %v94_v16  ;;  %v115_v23 = vrot.slane %v1025_v17, %v114_v14  ;;  %v105_v28 = vsub.f32 %v73_v15, %v97_v22  ;;  %v138_v11 = vsub.s32 6, %v1022_v7 }
  0x7c   :  { %775 = vmatprep.subr.bf16.mxu1 %v774_v27  ;;  %v119_v27 = vrot.slane %v1025_v17, %v118_v18  ;;  %v99_v14 = vsel %vm91_vm10, %v75_v6, %v83_v1  ;;  %v142_v15 = vsub.s32 7, %v1022_v7  ;;  %v131_v18 = vrot.slane %v1025_v17, %v130_v8 }
  0x7d   :  { %v152_v30 = vmul.f32 %v115_v23, %v102_v0  ;;  %v139_v20 = vrot.slane %v1025_v17, %v138_v11  ;;  %v107_v21 = vsub.f32 %v75_v6, %v99_v14  ;;  %v135_v22 = vrot.slane %v1025_v17, %v134_v12 }
  0x7e   :  { %745 = vmatpush1.bf16.msra.mxu0 %v744_v33  ;;  %v153_v32 = vmul.f32 %v119_v27, %v103_v26  ;;  %v155_v33 = vmul.f32 %v127_v29, %v105_v28  ;;  %v143_v23 = vrot.slane %v1025_v17, %v142_v15 }
  0x7f   :  { %777 = vmatpush1.bf16.msra.mxu1 %v776_v34  ;;  %747 = vmatprep.subr.bf16.mxu0 %v746_v35  ;;  %v160_v34 = vand.u32 2147483647, %v152_v30  ;;  %v157_v26 = vmul.f32 %v135_v22, %v107_v21 }
  0x80   :  { %779 = vmatprep.subr.bf16.mxu1 %v778_v39  ;;  %v161_v36 = vand.u32 2147483647, %v153_v32  ;;  %v163_v37 = vand.u32 2147483647, %v155_v33 }
  0x81   :  { %v176_v38 = vmul.f32 %v160_v34, %v160_v34  ;;  %vm168_vm4 = vcmp.lt.f32.partialorder %v160_v34, 0.11111111  ;;  %v654_v43 = vadd.f32 -0.055555556, %v160_v34 }
  0x82   :  { %749 = vmatpush1.bf16.msra.mxu0 %v748_v45  ;;  %v177_v40 = vmul.f32 %v161_v36, %v161_v36  ;;  %v179_v41 = vmul.f32 %v163_v37, %v163_v37  ;;  %vm169_vm6 = vcmp.lt.f32.partialorder %v161_v36, 0.11111111  ;;  %v657_v50 = vadd.f32 -0.055555556, %v163_v37 }
  0x83   :  { %781 = vmatpush1.bf16.msra.mxu1 %v780_v46  ;;  %751 = vmatprep.subr.bf16.mxu0 %v750_v47  ;;  %v184_v42 = vmul.f32 4.5, %v176_v38  ;;  %v655_v47 = vadd.f32 -0.055555556, %v161_v36  ;;  %vm171_vm7 = vcmp.lt.f32.partialorder %v163_v37, 0.11111111 }
  0x84   :  { %783 = vmatprep.subr.bf16.mxu1 %v782_v52  ;;  %v185_v46 = vmul.f32 4.5, %v177_v40  ;;  %v187_v49 = vmul.f32 4.5, %v179_v41 }
  0x85   :  { %v200_v51 = vsel %vm168_vm4, %v184_v42, %v654_v43 }
  0x86   :  { %753 = vmatpush1.bf16.msra.mxu0 %v752_v58  ;;  %v201_v53 = vsel %vm169_vm6, %v185_v46, %v655_v47  ;;  %v203_v55 = vsel %vm171_vm7, %v187_v49, %v657_v50 }
  0x87   :  { %785 = vmatpush1.bf16.msra.mxu1 %v784_v59  ;;  %755 = vmatprep.subr.bf16.mxu0 %v754_v60  ;;  %v82_v59 = vld [vmem:[#allocation5 + $0x20] sm:$0xff] }
  0x88   :  { %787 = vmatprep.subr.bf16.mxu1 %v786_v63  ;;  %v84_v63 = vld [vmem:[#allocation5 + $0x30] sm:$0xff]  ;;  %vm90_vm8 = vcmp.ne.f32.partialorder %v82_v59, %v82_v59 }
  0x89   :  { %vm92_vm9 = vcmp.ne.f32.partialorder %v84_v63, %v84_v63 }
  0x8a   :  { %757 = vmatpush1.bf16.msra.mxu0 %v756_v3  ;;  %v85_v3 = vld [vmem:[#allocation5 + $0x38] sm:$0xff]  ;;  %v100_v13 = vsel %vm92_vm9, %v76_v5, %v84_v63 }
  0x8b   :  { %789 = vmatpush1.bf16.msra.mxu1 %v788_v4  ;;  %v74_v4 = vld [vmem:[#allocation2 + $0x20] sm:$0xff]  ;;  %vm93_vm11 = vcmp.ne.f32.partialorder %v85_v3, %v85_v3  ;;  %v108_v19 = vsub.f32 %v76_v5, %v100_v13 }
  0x8c   :  { %v98_v10 = vsel %vm90_vm8, %v74_v4, %v82_v59  ;;  %v101_v16 = vsel %vm93_vm11, %v77_v9, %v85_v3 }
  0x8d   :  { %544 = vmatmul.mubr.f32.vlgmr.msra.gmra.mrb[2].mxu0 %v1014_v48  ;;  %v109_v0 = vsub.f32 %v77_v9, %v101_v16 }
  0x8e   :  { %615 = vmatmul.mubr.f32.vlgmr.msra.gmra.mrb[2].mxu1 %v1014_v48  ;;  %v122_v48 = vsub.s32 2, %v1022_v7  ;;  %v165_v7 = vand.u32 2147483647, %v157_v26 }
  0x8f   :  { %v159_v27 = vmul.f32 %v143_v23, %v109_v0 }
  0x90   :  { %v123_v25 = vrot.slane %v1025_v17, %v122_v48  ;;  %v106_v48 = vsub.f32 %v74_v4, %v98_v10  ;;  %v181_v33 = vmul.f32 %v165_v7, %v165_v7  ;;  %v659_v17 = vadd.f32 -0.055555556, %v165_v7 }
  0x91   :  { %v167_v30 = vand.u32 2147483647, %v159_v27  ;;  %vm173_vm14 = vcmp.lt.f32.partialorder %v165_v7, 0.11111111 }
  0x92   :  { %v154_v31 = vmul.f32 %v123_v25, %v104_v24  ;;  %v156_v24 = vmul.f32 %v131_v18, %v106_v48  ;;  %v158_v25 = vmul.f32 %v139_v20, %v108_v19 }
  0x93   :  { %v183_v34 = vmul.f32 %v167_v30, %v167_v30  ;;  %v661_v41 = vadd.f32 -0.055555556, %v167_v30  ;;  %vm175_vm15 = vcmp.lt.f32.partialorder %v167_v30, 0.11111111 }
  0x94   :  { %v162_v35 = vand.u32 2147483647, %v154_v31  ;;  %v164_v28 = vand.u32 2147483647, %v156_v24  ;;  %v166_v29 = vand.u32 2147483647, %v158_v25 }
  0x95   :  { %v191_v40 = vmul.f32 4.5, %v183_v34 }
  0x96   :  { %v178_v39 = vmul.f32 %v162_v35, %v162_v35  ;;  %v656_v44 = vadd.f32 -0.055555556, %v162_v35  ;;  %vm170_vm5 = vcmp.lt.f32.partialorder %v162_v35, 0.11111111  ;;  %v180_v31 = vmul.f32 %v164_v28, %v164_v28 }
  0x97   :  { %v182_v32 = vmul.f32 %v166_v29, %v166_v29  ;;  %vm172_vm12 = vcmp.lt.f32.partialorder %v164_v28, 0.11111111  ;;  %v658_v36 = vadd.f32 -0.055555556, %v164_v28  ;;  %v660_v37 = vadd.f32 -0.055555556, %v166_v29 }
  0x98   :  { %v186_v45 = vmul.f32 4.5, %v178_v39  ;;  %v188_v35 = vmul.f32 4.5, %v180_v31  ;;  %vm174_vm13 = vcmp.lt.f32.partialorder %v166_v29, 0.11111111  ;;  %v189_v39 = vmul.f32 4.5, %v181_v33 }
  0x99   :  { %v190_v38 = vmul.f32 4.5, %v182_v32  ;;  %v207_v46 = vsel %vm175_vm15, %v191_v40, %v661_v41 }
  0x9a   :  { %v202_v52 = vsel %vm170_vm5, %v186_v45, %v656_v44  ;;  %v204_v42 = vsel %vm172_vm12, %v188_v35, %v658_v36  ;;  %v205_v44 = vsel %vm173_vm14, %v189_v39, %v659_v17 }
  0x9b   :  { %v206_v43 = vsel %vm174_vm13, %v190_v38, %v660_v37 }
 0x140   :  { %v403_v54 = vpop.f32.mrb[0].mxu0 }
 0x141   :  { %v621_v56 = vmul.f32 %v403_v54, %v200_v51  ;;  %v474_v57 = vpop.f32.mrb[0].mxu1  ;;  %v405_v58 = vpop.f32.mrb[1].mxu0 }
 0x142   :  { %v623_v60 = vmul.f32 %v474_v57, %v202_v52  ;;  %v622_v61 = vmul.f32 %v405_v58, %v201_v53  ;;  %v476_v62 = vpop.f32.mrb[1].mxu1 }
 0x143   :  { %629 = vst [vmem:[#allocation10] sm:$0xff] %v621_v56  ;;  %v624_v2 = vmul.f32 %v476_v62, %v203_v55 }
 0x144   :  { %631 = vst [vmem:[#allocation10 + $0x10] sm:$0xff] %v623_v60  ;;  %630 = vst [vmem:[#allocation10 + $0x8] sm:$0xff] %v622_v61 }
 0x145   :  { %632 = vst [vmem:[#allocation10 + $0x18] sm:$0xff] %v624_v2 }
 0x160   :  { %v545_v45 = vpop.f32.mrb[2].mxu0 }
 0x161   :  { %v625_v47 = vmul.f32 %v545_v45, %v204_v42  ;;  %v616_v49 = vpop.f32.mrb[2].mxu1  ;;  %v547_v50 = vpop.f32.mrb[3].mxu0 }
 0x162   :  { %v627_v51 = vmul.f32 %v616_v49, %v206_v43  ;;  %v626_v52 = vmul.f32 %v547_v50, %v205_v44  ;;  %v618_v53 = vpop.f32.mrb[3].mxu1 }
 0x163   :  { %633 = vst [vmem:[#allocation10 + $0x20] sm:$0xff] %v625_v47  ;;  %v628_v54 = vmul.f32 %v618_v53, %v207_v46 }
 0x164   :  { %635 = vst [vmem:[#allocation10 + $0x30] sm:$0xff] %v627_v51  ;;  %634 = vst [vmem:[#allocation10 + $0x28] sm:$0xff] %v626_v52 }
 0x165   :  { %636 = vst [vmem:[#allocation10 + $0x38] sm:$0xff] %v628_v54 }
 0x166   :  { %897 = shalt.err (!%p894_p8)
}
 0x167   :  { %s898_s19 = scalar_lea.hbm %s1059_s5, 1024 }
 0x168   :  { %p899_p9 = scmp.ne.s32.totalorder %s1059_s5, %s898_s19  ;;  %p902_p10 = scmp.lt.u32.totalorder %s898_s19, %s1059_s5 }
 0x16a   :  { %p904_p11 = pnand %p902_p10, %p899_p9 }
 0x16c   :  { %907 = shalt.err (!%p904_p11)
}
 0x16d   :  { %646 = dma.vmem_to_hbm [thread:$0]  %s644_s15, 1024, %s1059_s5, [#allocation4]  }
 0x16e   :  { %914 = dma.done.wait [#allocation4], 1024  }
 0x16f   :  { %915 = vsyncadd [#allocation4], 4294966272 }
 0x170   :  { %650 = vsyncpa [#allocation3], 1 }
 0x171   :  { %651 = vsyncpa [#allocation6], 1 }
 0x172   :  { %652 = vsyncpa [#allocation9], 1 }
 0x173   :  { %653 = vsyncpa [#allocation4], 1 }

</bundles_post_ra>
